<compile_context>
chip_gen: v5e
topology: v5e:2x2
jax: 0.10.0
libtpu: 0.0.40
codegen_flags: <defaults>
</compile_context>

<pallas_src>
import functools

import jax
import jax.numpy as jnp
from jax.experimental import pallas as pl
from jax.experimental.pallas import tpu as pltpu


def _round_up(a, m):
    return (a + m - 1) // m * m


def _pad2d(a, rows, cols):
    return jnp.pad(a, ((0, rows - a.shape[0]), (0, cols - a.shape[1])))


def _linear_bnstats_kernel(x_ref, w_ref, b_ref, h_ref, stat0_ref, stat1_ref, *,
                           apply_relu, n_valid, tile_rows, eps):
    """h = (relu?)(x @ w + b); accumulate per-feature sum / sumsq over valid rows;
    on the last grid step convert the accumulators into (scale, shift)."""
    i = pl.program_id(0)

    @pl.when(i == 0)
    def _():
        stat0_ref[...] = jnp.zeros_like(stat0_ref)
        stat1_ref[...] = jnp.zeros_like(stat1_ref)

    h = jnp.dot(x_ref[...], w_ref[...],
                preferred_element_type=jnp.float32) + b_ref[...]
    if apply_relu:
        h = jnp.maximum(h, 0.0)
    h_ref[...] = h.astype(h_ref.dtype)

    # Mask rows >= n_valid (row padding) so BN batch stats stay exact.
    row = i * tile_rows + jax.lax.broadcasted_iota(jnp.int32, (tile_rows, 1), 0)
    hm = jnp.where(row < n_valid, h, 0.0)
    stat0_ref[...] += jnp.sum(hm, axis=0, keepdims=True)        # running sum
    stat1_ref[...] += jnp.sum(hm * hm, axis=0, keepdims=True)   # running sumsq

    @pl.when(i == pl.num_programs(0) - 1)
    def _():
        inv_n = jnp.float32(1.0 / n_valid)
        mean = stat0_ref[...] * inv_n
        var = jnp.maximum(stat1_ref[...] * inv_n - mean * mean, 0.0)
        scale = jax.lax.rsqrt(var + jnp.float32(eps))
        stat0_ref[...] = scale            # scale = 1/sqrt(var + eps)
        stat1_ref[...] = -mean * scale    # shift = -mean * scale


def _linear_kernel(x_ref, w_ref, b_ref, o_ref):
    """o = x @ w + b (BN already folded into w/b by the wrapper)."""
    o_ref[...] = (jnp.dot(x_ref[...], w_ref[...],
                          preferred_element_type=jnp.float32)
                  + b_ref[...]).astype(o_ref.dtype)


@functools.partial(jax.jit, static_argnames=("out_dim", "mxu_dtype", "tile_rows"))
def output_layer_forward(x, w1, b1, w2, w3, b3, *, out_dim,
                         mxu_dtype=jnp.float32, tile_rows=512):
    """x: (B, S, D1) float32.  Weights are (in, out) (transposed vs nn.Linear):
    w1: (D1, D2), b1: (1, D2), w2: (D2, D3), w3: (D3, out_dim), b3: (1, out_dim).
    mxu_dtype=jnp.bfloat16 enables the v6e/v7x fast MXU path."""
    f32 = jnp.float32
    B, S, D1 = x.shape
    D2 = w1.shape[1]
    D3 = w2.shape[1]
    N = B * S

    # Lane-dense padding (multiples of 128) for all feature dims.
    D1p = _round_up(D1, 128)
    D2p = _round_up(D2, 128)
    D3p = _round_up(D3, 128)
    Op = _round_up(out_dim, 128)

    # Row-tile sizing: keep double-buffered input+output tiles under ~8 MiB so
    # there is ample headroom even on v7x (64 MiB physical / 32 MiB scoped VMEM).
    itemsize = jnp.dtype(mxu_dtype).itemsize
    d_max = max(D1p, D2p, D3p, Op)
    cap = max(8, ((8 * 1024 * 1024) // (4 * d_max * itemsize)) // 8 * 8)
    TN = int(max(8, min(tile_rows, cap, _round_up(N, 8))))
    Np = _round_up(N, TN)
    n_tiles = Np // TN

    # Padded operands (padded lanes/rows are zero; BN of all-zero padded columns
    # yields scale=rsqrt(eps), shift=0 which multiplies zero weight rows -> exact).
    x2d = _pad2d(x.reshape(N, D1).astype(f32), Np, D1p).astype(mxu_dtype)
    w1p = _pad2d(w1.astype(f32), D1p, D2p)
    b1p = _pad2d(b1.reshape(1, -1).astype(f32), 1, D2p)
    w2p = _pad2d(w2.astype(f32), D2p, D3p)
    w3p = _pad2d(w3.astype(f32), D3p, Op)
    b3p = _pad2d(b3.reshape(1, -1).astype(f32), 1, Op)

    def row_spec(d):                 # tiled over the N (row) grid axis
        return pl.BlockSpec((TN, d), lambda i: (i, 0))

    def resident_spec(r, d):         # same block every step -> fetched once
        return pl.BlockSpec((r, d), lambda i: (0, 0))

    vmem_bytes = 32 * 1024 * 1024
    reduce_params = pltpu.CompilerParams(
        dimension_semantics=("arbitrary",), vmem_limit_bytes=vmem_bytes)
    parallel_params = pltpu.CompilerParams(
        dimension_semantics=("parallel",), vmem_limit_bytes=vmem_bytes)

    def stats_pass(xin, w, b, d_in, d_out, apply_relu):
        kernel = functools.partial(
            _linear_bnstats_kernel, apply_relu=apply_relu,
            n_valid=N, tile_rows=TN, eps=1e-5)
        cost = pl.CostEstimate(
            flops=2 * Np * d_in * d_out,
            transcendentals=d_out,
            bytes_accessed=(Np * (d_in + d_out) + d_in * d_out) * itemsize
                           + (3 * d_out + d_out) * 4)
        return pl.pallas_call(
            kernel,
            grid=(n_tiles,),
            in_specs=[row_spec(d_in),
                      resident_spec(d_in, d_out),
                      resident_spec(1, d_out)],
            out_specs=[row_spec(d_out),
                       resident_spec(1, d_out),
                       resident_spec(1, d_out)],
            out_shape=[jax.ShapeDtypeStruct((Np, d_out), mxu_dtype),
                       jax.ShapeDtypeStruct((1, d_out), f32),
                       jax.ShapeDtypeStruct((1, d_out), f32)],
            compiler_params=reduce_params,
            cost_estimate=cost,
        )(xin, w.astype(mxu_dtype), b)

    # Pass 1: linear1 + ReLU, with BN1 batch-stat accumulation -> (scale1, shift1).
    h1, scale1, shift1 = stats_pass(x2d, w1p, b1p, D1p, D2p, apply_relu=True)

    # Fold BN1 into linear2:  bn(h) @ W == h @ (scale * W) + shift @ W.
    w2_eff = scale1.T * w2p                  # (D2p, D3p)
    b2_eff = shift1 @ w2p                    # (1, D3p)

    # Pass 2: (BN1-folded) linear2, with BN2 batch-stat accumulation.
    h2, scale2, shift2 = stats_pass(h1, w2_eff, b2_eff, D2p, D3p, apply_relu=False)

    # Fold BN2 into linear3.
    w3_eff = scale2.T * w3p                  # (D3p, Op)
    b3_eff = b3p + shift2 @ w3p              # (1, Op)

    # Pass 3: final linear; rows independent -> "parallel" (v7x megacore split).
    cost3 = pl.CostEstimate(
        flops=2 * Np * D3p * Op,
        transcendentals=0,
        bytes_accessed=(Np * D3p + D3p * Op) * itemsize + Np * Op * 4)
    out = pl.pallas_call(
        _linear_kernel,
        grid=(n_tiles,),
        in_specs=[row_spec(D3p),
                  resident_spec(D3p, Op),
                  resident_spec(1, Op)],
        out_specs=row_spec(Op),
        out_shape=jax.ShapeDtypeStruct((Np, Op), f32),
        compiler_params=parallel_params,
        cost_estimate=cost3,
    )(h2, w3_eff.astype(mxu_dtype), b3_eff)

    return out[:N, :out_dim].reshape(B, S, out_dim)


def init_params(key, linear1_in_dim, linear2_in_dim, linear3_in_dim, out_dim):
    """Deterministic synthetic parameters (PyTorch-like uniform fan-in scaling).
    Weights stored transposed vs nn.Linear, i.e. (in, out), so kernels do x @ W."""
    k1, k2, k3, k4, k5 = jax.random.split(key, 5)

    def u(k, shape, fan_in):
        bound = 1.0 / jnp.sqrt(jnp.float32(fan_in))
        return jax.random.uniform(k, shape, jnp.float32, -bound, bound)

    w1 = u(k1, (linear1_in_dim, linear2_in_dim), linear1_in_dim)
    b1 = u(k2, (1, linear2_in_dim), linear1_in_dim)
    w2 = u(k3, (linear2_in_dim, linear3_in_dim), linear2_in_dim)
    # linear3 declared with in_features = linear1_in_dim (== linear3_in_dim here)
    w3 = u(k4, (linear3_in_dim, out_dim), linear1_in_dim)
    b3 = u(k5, (1, out_dim), linear1_in_dim)
    return w1, b1, w2, w3, b3


def reference(x, w1, b1, w2, w3, b3):
    """Pure-JAX f32 reference of the PyTorch forward (train-mode BN)."""
    B, S, _ = x.shape
    h = jnp.maximum(x.reshape(B * S, -1) @ w1 + b1, 0.0)
    h = (h - h.mean(0)) * jax.lax.rsqrt(h.var(0) + 1e-5)
    h = h @ w2
    h = (h - h.mean(0)) * jax.lax.rsqrt(h.var(0) + 1e-5)
    return (h @ w3 + b3).reshape(B, S, -1)


if __name__ == "__main__":
    key = jax.random.PRNGKey(0)

    def run_case(B, S, d1, d2, d3, out_dim, *, mxu_dtype, tile_rows, atol, rtol):
        kx, kp = jax.random.split(jax.random.fold_in(key, B * 1000 + S))
        x = jax.random.normal(kx, (B, S, d1), jnp.float32)
        w1, b1, w2, w3, b3 = init_params(kp, d1, d2, d3, out_dim)
        y = output_layer_forward(x, w1, b1, w2, w3, b3, out_dim=out_dim,
                                 mxu_dtype=mxu_dtype, tile_rows=tile_rows)
        jax.block_until_ready(y)
        y_ref = reference(x, w1, b1, w2, w3, b3)
        assert y.shape == (B, S, out_dim)
        err = float(jnp.max(jnp.abs(y - y_ref)))
        assert jnp.allclose(y, y_ref, atol=atol, rtol=rtol), err
        return y

    # f32 path, single row tile.
    run_case(2, 8, 32, 64, 32, 16, mxu_dtype=jnp.float32, tile_rows=512,
             atol=1e-4, rtol=1e-4)
    # f32 path, multiple row tiles with a ragged last tile (exercises masked BN stats).
    run_case(2, 7, 32, 64, 32, 16, mxu_dtype=jnp.float32, tile_rows=8,
             atol=1e-4, rtol=1e-4)
    # bf16 MXU fast path (v6e/v7x); looser tolerance vs f32 reference.
    run_case(2, 8, 32, 64, 32, 16, mxu_dtype=jnp.bfloat16, tile_rows=512,
             atol=5e-2, rtol=5e-2)

    print("KERNEL_OK")
</pallas_src>

<mosaic_0001>
module attributes {stable_mosaic.version = 11 : i64} {
  func.func @_linear_bnstats_kernel(%arg0: i32, %arg1: memref<16x128xf32, #tpu.memory_space<vmem>>, %arg2: memref<128x128xf32, #tpu.memory_space<vmem>>, %arg3: memref<1x128xf32, #tpu.memory_space<vmem>>, %arg4: memref<16x128xf32, #tpu.memory_space<vmem>>, %arg5: memref<1x128xf32, #tpu.memory_space<vmem>>, %arg6: memref<1x128xf32, #tpu.memory_space<vmem>>) attributes {dimension_semantics = [#tpu.dimension_semantics<arbitrary>], iteration_bounds = array<i64: 1>, scalar_prefetch = 0 : i64, scratch_operands = 0 : i64, tpu.core_type = #tpu.core_type<tc>, window_params = [{transform_indices = @transform_0, window_bounds = array<i64: 16, 128>}, {pipeline_mode = #tpu.pipeline_mode<synchronous>, transform_indices = @transform_1, window_bounds = array<i64: 128, 128>}, {pipeline_mode = #tpu.pipeline_mode<synchronous>, transform_indices = @transform_2, window_bounds = array<i64: 1, 128>}, {transform_indices = @transform_3, window_bounds = array<i64: 16, 128>}, {pipeline_mode = #tpu.pipeline_mode<synchronous>, transform_indices = @transform_4, window_bounds = array<i64: 1, 128>}, {pipeline_mode = #tpu.pipeline_mode<synchronous>, transform_indices = @transform_5, window_bounds = array<i64: 1, 128>}]} {
    %c0_i32 = arith.constant 0 : i32
    %0 = arith.cmpi eq, %arg0, %c0_i32 : i32
    %1 = arith.extui %0 : i1 to i32
    %c0_i32_0 = arith.constant 0 : i32
    %2 = arith.cmpi ne, %1, %c0_i32_0 : i32
    scf.if %2 {
      %cst_23 = arith.constant 0.000000e+00 : f32
      %36 = vector.broadcast %cst_23 : f32 to vector<1x128xf32>
      %c0_24 = arith.constant 0 : index
      %c0_25 = arith.constant 0 : index
      %37 = vector.load %arg5[%c0_24, %c0_25] : memref<1x128xf32, #tpu.memory_space<vmem>>, vector<1x128xf32>
      tpu.vector_store %arg5[%c0_24, %c0_25], %36 {strides = array<i32>} : memref<1x128xf32, #tpu.memory_space<vmem>>, vector<1x128xf32>,
      %cst_26 = arith.constant 0.000000e+00 : f32
      %38 = vector.broadcast %cst_26 : f32 to vector<1x128xf32>
      %c0_27 = arith.constant 0 : index
      %c0_28 = arith.constant 0 : index
      %39 = vector.load %arg6[%c0_27, %c0_28] : memref<1x128xf32, #tpu.memory_space<vmem>>, vector<1x128xf32>
      tpu.vector_store %arg6[%c0_27, %c0_28], %38 {strides = array<i32>} : memref<1x128xf32, #tpu.memory_space<vmem>>, vector<1x128xf32>,
    } else {
    }
    %c0 = arith.constant 0 : index
    %c0_1 = arith.constant 0 : index
    %3 = vector.load %arg1[%c0, %c0_1] : memref<16x128xf32, #tpu.memory_space<vmem>>, vector<16x128xf32>
    %c0_2 = arith.constant 0 : index
    %c0_3 = arith.constant 0 : index
    %4 = vector.load %arg2[%c0_2, %c0_3] : memref<128x128xf32, #tpu.memory_space<vmem>>, vector<128x128xf32>
    %cst = arith.constant dense<0.000000e+00> : vector<16x128xf32>
    %5 = tpu.matmul %3, %4, %cst {dimension_numbers = #tpu.dot_dimension_numbers<[1], [0], [0], [1], [0, 0, 1, 1], [], []>} : vector<16x128xf32>, vector<128x128xf32>, vector<16x128xf32> -> vector<16x128xf32>
    %c0_4 = arith.constant 0 : index
    %c0_5 = arith.constant 0 : index
    %6 = vector.load %arg3[%c0_4, %c0_5] : memref<1x128xf32, #tpu.memory_space<vmem>>, vector<1x128xf32>
    %7 = vector.broadcast %6 : vector<1x128xf32> to vector<16x128xf32>
    %8 = arith.addf %5, %7 : vector<16x128xf32>
    %cst_6 = arith.constant 0.000000e+00 : f32
    %9 = vector.broadcast %cst_6 : f32 to vector<16x128xf32>
    %10 = arith.maximumf %8, %9 : vector<16x128xf32>
    %c0_7 = arith.constant 0 : index
    %c0_8 = arith.constant 0 : index
    %11 = vector.load %arg4[%c0_7, %c0_8] : memref<16x128xf32, #tpu.memory_space<vmem>>, vector<16x128xf32>
    tpu.vector_store %arg4[%c0_7, %c0_8], %10 {strides = array<i32>} : memref<16x128xf32, #tpu.memory_space<vmem>>, vector<16x128xf32>,
    %c16_i32 = arith.constant 16 : i32
    %12 = arith.muli %arg0, %c16_i32 : i32
    %13 = tpu.iota {dimensions = array<i32: 0>} : vector<16x1xi32>
    %14 = vector.broadcast %12 : i32 to vector<16x1xi32>
    %15 = arith.addi %14, %13 : vector<16x1xi32>
    %c16_i32_9 = arith.constant 16 : i32
    %16 = vector.broadcast %c16_i32_9 : i32 to vector<16x1xi32>
    %17 = arith.cmpi slt, %15, %16 : vector<16x1xi32>
    %cst_10 = arith.constant 0.000000e+00 : f32
    %18 = vector.shape_cast %17 : vector<16x1xi1> to vector<16x1xi1>
    %19 = vector.broadcast %18 : vector<16x1xi1> to vector<16x128xi1>
    %20 = vector.broadcast %cst_10 : f32 to vector<16x128xf32>
    %21 = arith.select %19, %10, %20 : vector<16x128xi1>, vector<16x128xf32>
    %c0_11 = arith.constant 0 : index
    %c0_12 = arith.constant 0 : index
    %22 = vector.load %arg5[%c0_11, %c0_12] : memref<1x128xf32, #tpu.memory_space<vmem>>, vector<1x128xf32>
    %cst_13 = arith.constant dense<0.000000e+00> : vector<128xf32>
    %23 = vector.multi_reduction <add>, %21, %cst_13 [0] : vector<16x128xf32> to vector<128xf32>
    %24 = vector.shape_cast %23 : vector<128xf32> to vector<1x128xf32>
    %25 = arith.addf %22, %24 : vector<1x128xf32>
    %c0_14 = arith.constant 0 : index
    %c0_15 = arith.constant 0 : index
    %26 = vector.load %arg5[%c0_14, %c0_15] : memref<1x128xf32, #tpu.memory_space<vmem>>, vector<1x128xf32>
    tpu.vector_store %arg5[%c0_14, %c0_15], %25 {strides = array<i32>} : memref<1x128xf32, #tpu.memory_space<vmem>>, vector<1x128xf32>,
    %c0_16 = arith.constant 0 : index
    %c0_17 = arith.constant 0 : index
    %27 = vector.load %arg6[%c0_16, %c0_17] : memref<1x128xf32, #tpu.memory_space<vmem>>, vector<1x128xf32>
    %28 = arith.mulf %21, %21 : vector<16x128xf32>
    %cst_18 = arith.constant dense<0.000000e+00> : vector<128xf32>
    %29 = vector.multi_reduction <add>, %28, %cst_18 [0] : vector<16x128xf32> to vector<128xf32>
    %30 = vector.shape_cast %29 : vector<128xf32> to vector<1x128xf32>
    %31 = arith.addf %27, %30 : vector<1x128xf32>
    %c0_19 = arith.constant 0 : index
    %c0_20 = arith.constant 0 : index
    %32 = vector.load %arg6[%c0_19, %c0_20] : memref<1x128xf32, #tpu.memory_space<vmem>>, vector<1x128xf32>
    tpu.vector_store %arg6[%c0_19, %c0_20], %31 {strides = array<i32>} : memref<1x128xf32, #tpu.memory_space<vmem>>, vector<1x128xf32>,
    %c0_i32_21 = arith.constant 0 : i32
    %33 = arith.cmpi eq, %arg0, %c0_i32_21 : i32
    %34 = arith.extui %33 : i1 to i32
    %c0_i32_22 = arith.constant 0 : i32
    %35 = arith.cmpi ne, %34, %c0_i32_22 : i32
    scf.if %35 {
      %c0_23 = arith.constant 0 : index
      %c0_24 = arith.constant 0 : index
      %36 = vector.load %arg5[%c0_23, %c0_24] : memref<1x128xf32, #tpu.memory_space<vmem>>, vector<1x128xf32>
      %cst_25 = arith.constant 6.250000e-02 : f32
      %37 = vector.broadcast %cst_25 : f32 to vector<1x128xf32>
      %38 = arith.mulf %36, %37 : vector<1x128xf32>
      %c0_26 = arith.constant 0 : index
      %c0_27 = arith.constant 0 : index
      %39 = vector.load %arg6[%c0_26, %c0_27] : memref<1x128xf32, #tpu.memory_space<vmem>>, vector<1x128xf32>
      %cst_28 = arith.constant 6.250000e-02 : f32
      %40 = vector.broadcast %cst_28 : f32 to vector<1x128xf32>
      %41 = arith.mulf %39, %40 : vector<1x128xf32>
      %42 = arith.mulf %38, %38 : vector<1x128xf32>
      %43 = arith.subf %41, %42 : vector<1x128xf32>
      %cst_29 = arith.constant 0.000000e+00 : f32
      %44 = vector.broadcast %cst_29 : f32 to vector<1x128xf32>
      %45 = arith.maximumf %43, %44 : vector<1x128xf32>
      %cst_30 = arith.constant 9.99999974E-6 : f32
      %46 = vector.broadcast %cst_30 : f32 to vector<1x128xf32>
      %47 = arith.addf %45, %46 : vector<1x128xf32>
      %48 = math.rsqrt %47 : vector<1x128xf32>
      %c0_31 = arith.constant 0 : index
      %c0_32 = arith.constant 0 : index
      %49 = vector.load %arg5[%c0_31, %c0_32] : memref<1x128xf32, #tpu.memory_space<vmem>>, vector<1x128xf32>
      tpu.vector_store %arg5[%c0_31, %c0_32], %48 {strides = array<i32>} : memref<1x128xf32, #tpu.memory_space<vmem>>, vector<1x128xf32>,
      %cst_33 = arith.constant 0.000000e+00 : f32
      %50 = vector.broadcast %cst_33 : f32 to vector<1x128xf32>
      %51 = arith.subf %50, %38 : vector<1x128xf32>
      %52 = arith.mulf %51, %48 : vector<1x128xf32>
      %c0_34 = arith.constant 0 : index
      %c0_35 = arith.constant 0 : index
      %53 = vector.load %arg6[%c0_34, %c0_35] : memref<1x128xf32, #tpu.memory_space<vmem>>, vector<1x128xf32>
      tpu.vector_store %arg6[%c0_34, %c0_35], %52 {strides = array<i32>} : memref<1x128xf32, #tpu.memory_space<vmem>>, vector<1x128xf32>,
    } else {
    }
    return
  }
  func.func @transform_0(%arg0: i32) -> (i32, i32) {
    %c0_i32 = arith.constant 0 : i32
    %c0_i32_0 = arith.constant 0 : i32
    return %arg0, %c0_i32 : i32, i32
  }
  func.func @transform_1(%arg0: i32) -> (i32, i32) {
    %c0_i32 = arith.constant 0 : i32
    %c0_i32_0 = arith.constant 0 : i32
    %c0_i32_1 = arith.constant 0 : i32
    return %c0_i32, %c0_i32_0 : i32, i32
  }
  func.func @transform_2(%arg0: i32) -> (i32, i32) {
    %c0_i32 = arith.constant 0 : i32
    %c0_i32_0 = arith.constant 0 : i32
    %c0_i32_1 = arith.constant 0 : i32
    return %c0_i32, %c0_i32_0 : i32, i32
  }
  func.func @transform_3(%arg0: i32) -> (i32, i32) {
    %c0_i32 = arith.constant 0 : i32
    %c0_i32_0 = arith.constant 0 : i32
    return %arg0, %c0_i32 : i32, i32
  }
  func.func @transform_4(%arg0: i32) -> (i32, i32) {
    %c0_i32 = arith.constant 0 : i32
    %c0_i32_0 = arith.constant 0 : i32
    %c0_i32_1 = arith.constant 0 : i32
    return %c0_i32, %c0_i32_0 : i32, i32
  }
  func.func @transform_5(%arg0: i32) -> (i32, i32) {
    %c0_i32 = arith.constant 0 : i32
    %c0_i32_0 = arith.constant 0 : i32
    %c0_i32_1 = arith.constant 0 : i32
    return %c0_i32, %c0_i32_0 : i32, i32
  }
}

module attributes {stable_mosaic.version = 11 : i64} {
  func.func @_linear_bnstats_kernel(%arg0: i32, %arg1: memref<16x128xf32, #tpu.memory_space<vmem>>, %arg2: memref<128x128xf32, #tpu.memory_space<vmem>>, %arg3: memref<1x128xf32, #tpu.memory_space<vmem>>, %arg4: memref<16x128xf32, #tpu.memory_space<vmem>>, %arg5: memref<1x128xf32, #tpu.memory_space<vmem>>, %arg6: memref<1x128xf32, #tpu.memory_space<vmem>>) attributes {dimension_semantics = [#tpu.dimension_semantics<arbitrary>], iteration_bounds = array<i64: 1>, scalar_prefetch = 0 : i64, scratch_operands = 0 : i64, tpu.core_type = #tpu.core_type<tc>, window_params = [{transform_indices = @transform_0, window_bounds = array<i64: 16, 128>}, {pipeline_mode = #tpu.pipeline_mode<synchronous>, transform_indices = @transform_1, window_bounds = array<i64: 128, 128>}, {pipeline_mode = #tpu.pipeline_mode<synchronous>, transform_indices = @transform_2, window_bounds = array<i64: 1, 128>}, {transform_indices = @transform_3, window_bounds = array<i64: 16, 128>}, {pipeline_mode = #tpu.pipeline_mode<synchronous>, transform_indices = @transform_4, window_bounds = array<i64: 1, 128>}, {pipeline_mode = #tpu.pipeline_mode<synchronous>, transform_indices = @transform_5, window_bounds = array<i64: 1, 128>}]} {
    %c0_i32 = arith.constant 0 : i32
    %0 = arith.cmpi eq, %arg0, %c0_i32 : i32
    %1 = arith.extui %0 : i1 to i32
    %c0_i32_0 = arith.constant 0 : i32
    %2 = arith.cmpi ne, %1, %c0_i32_0 : i32
    scf.if %2 {
      %cst_22 = arith.constant 0.000000e+00 : f32
      %34 = vector.broadcast %cst_22 : f32 to vector<1x128xf32>
      %c0_23 = arith.constant 0 : index
      %c0_24 = arith.constant 0 : index
      %35 = vector.load %arg5[%c0_23, %c0_24] : memref<1x128xf32, #tpu.memory_space<vmem>>, vector<1x128xf32>
      tpu.vector_store %arg5[%c0_23, %c0_24], %34 {strides = array<i32>} : memref<1x128xf32, #tpu.memory_space<vmem>>, vector<1x128xf32>,
      %cst_25 = arith.constant 0.000000e+00 : f32
      %36 = vector.broadcast %cst_25 : f32 to vector<1x128xf32>
      %c0_26 = arith.constant 0 : index
      %c0_27 = arith.constant 0 : index
      %37 = vector.load %arg6[%c0_26, %c0_27] : memref<1x128xf32, #tpu.memory_space<vmem>>, vector<1x128xf32>
      tpu.vector_store %arg6[%c0_26, %c0_27], %36 {strides = array<i32>} : memref<1x128xf32, #tpu.memory_space<vmem>>, vector<1x128xf32>,
    } else {
    }
    %c0 = arith.constant 0 : index
    %c0_1 = arith.constant 0 : index
    %3 = vector.load %arg1[%c0, %c0_1] : memref<16x128xf32, #tpu.memory_space<vmem>>, vector<16x128xf32>
    %c0_2 = arith.constant 0 : index
    %c0_3 = arith.constant 0 : index
    %4 = vector.load %arg2[%c0_2, %c0_3] : memref<128x128xf32, #tpu.memory_space<vmem>>, vector<128x128xf32>
    %cst = arith.constant dense<0.000000e+00> : vector<16x128xf32>
    %5 = tpu.matmul %3, %4, %cst {dimension_numbers = #tpu.dot_dimension_numbers<[1], [0], [0], [1], [0, 0, 1, 1], [], []>} : vector<16x128xf32>, vector<128x128xf32>, vector<16x128xf32> -> vector<16x128xf32>
    %c0_4 = arith.constant 0 : index
    %c0_5 = arith.constant 0 : index
    %6 = vector.load %arg3[%c0_4, %c0_5] : memref<1x128xf32, #tpu.memory_space<vmem>>, vector<1x128xf32>
    %7 = vector.broadcast %6 : vector<1x128xf32> to vector<16x128xf32>
    %8 = arith.addf %5, %7 : vector<16x128xf32>
    %c0_6 = arith.constant 0 : index
    %c0_7 = arith.constant 0 : index
    %9 = vector.load %arg4[%c0_6, %c0_7] : memref<16x128xf32, #tpu.memory_space<vmem>>, vector<16x128xf32>
    tpu.vector_store %arg4[%c0_6, %c0_7], %8 {strides = array<i32>} : memref<16x128xf32, #tpu.memory_space<vmem>>, vector<16x128xf32>,
    %c16_i32 = arith.constant 16 : i32
    %10 = arith.muli %arg0, %c16_i32 : i32
    %11 = tpu.iota {dimensions = array<i32: 0>} : vector<16x1xi32>
    %12 = vector.broadcast %10 : i32 to vector<16x1xi32>
    %13 = arith.addi %12, %11 : vector<16x1xi32>
    %c16_i32_8 = arith.constant 16 : i32
    %14 = vector.broadcast %c16_i32_8 : i32 to vector<16x1xi32>
    %15 = arith.cmpi slt, %13, %14 : vector<16x1xi32>
    %cst_9 = arith.constant 0.000000e+00 : f32
    %16 = vector.shape_cast %15 : vector<16x1xi1> to vector<16x1xi1>
    %17 = vector.broadcast %16 : vector<16x1xi1> to vector<16x128xi1>
    %18 = vector.broadcast %cst_9 : f32 to vector<16x128xf32>
    %19 = arith.select %17, %8, %18 : vector<16x128xi1>, vector<16x128xf32>
    %c0_10 = arith.constant 0 : index
    %c0_11 = arith.constant 0 : index
    %20 = vector.load %arg5[%c0_10, %c0_11] : memref<1x128xf32, #tpu.memory_space<vmem>>, vector<1x128xf32>
    %cst_12 = arith.constant dense<0.000000e+00> : vector<128xf32>
    %21 = vector.multi_reduction <add>, %19, %cst_12 [0] : vector<16x128xf32> to vector<128xf32>
    %22 = vector.shape_cast %21 : vector<128xf32> to vector<1x128xf32>
    %23 = arith.addf %20, %22 : vector<1x128xf32>
    %c0_13 = arith.constant 0 : index
    %c0_14 = arith.constant 0 : index
    %24 = vector.load %arg5[%c0_13, %c0_14] : memref<1x128xf32, #tpu.memory_space<vmem>>, vector<1x128xf32>
    tpu.vector_store %arg5[%c0_13, %c0_14], %23 {strides = array<i32>} : memref<1x128xf32, #tpu.memory_space<vmem>>, vector<1x128xf32>,
    %c0_15 = arith.constant 0 : index
    %c0_16 = arith.constant 0 : index
    %25 = vector.load %arg6[%c0_15, %c0_16] : memref<1x128xf32, #tpu.memory_space<vmem>>, vector<1x128xf32>
    %26 = arith.mulf %19, %19 : vector<16x128xf32>
    %cst_17 = arith.constant dense<0.000000e+00> : vector<128xf32>
    %27 = vector.multi_reduction <add>, %26, %cst_17 [0] : vector<16x128xf32> to vector<128xf32>
    %28 = vector.shape_cast %27 : vector<128xf32> to vector<1x128xf32>
    %29 = arith.addf %25, %28 : vector<1x128xf32>
    %c0_18 = arith.constant 0 : index
    %c0_19 = arith.constant 0 : index
    %30 = vector.load %arg6[%c0_18, %c0_19] : memref<1x128xf32, #tpu.memory_space<vmem>>, vector<1x128xf32>
    tpu.vector_store %arg6[%c0_18, %c0_19], %29 {strides = array<i32>} : memref<1x128xf32, #tpu.memory_space<vmem>>, vector<1x128xf32>,
    %c0_i32_20 = arith.constant 0 : i32
    %31 = arith.cmpi eq, %arg0, %c0_i32_20 : i32
    %32 = arith.extui %31 : i1 to i32
    %c0_i32_21 = arith.constant 0 : i32
    %33 = arith.cmpi ne, %32, %c0_i32_21 : i32
    scf.if %33 {
      %c0_22 = arith.constant 0 : index
      %c0_23 = arith.constant 0 : index
      %34 = vector.load %arg5[%c0_22, %c0_23] : memref<1x128xf32, #tpu.memory_space<vmem>>, vector<1x128xf32>
      %cst_24 = arith.constant 6.250000e-02 : f32
      %35 = vector.broadcast %cst_24 : f32 to vector<1x128xf32>
      %36 = arith.mulf %34, %35 : vector<1x128xf32>
      %c0_25 = arith.constant 0 : index
      %c0_26 = arith.constant 0 : index
      %37 = vector.load %arg6[%c0_25, %c0_26] : memref<1x128xf32, #tpu.memory_space<vmem>>, vector<1x128xf32>
      %cst_27 = arith.constant 6.250000e-02 : f32
      %38 = vector.broadcast %cst_27 : f32 to vector<1x128xf32>
      %39 = arith.mulf %37, %38 : vector<1x128xf32>
      %40 = arith.mulf %36, %36 : vector<1x128xf32>
      %41 = arith.subf %39, %40 : vector<1x128xf32>
      %cst_28 = arith.constant 0.000000e+00 : f32
      %42 = vector.broadcast %cst_28 : f32 to vector<1x128xf32>
      %43 = arith.maximumf %41, %42 : vector<1x128xf32>
      %cst_29 = arith.constant 9.99999974E-6 : f32
      %44 = vector.broadcast %cst_29 : f32 to vector<1x128xf32>
      %45 = arith.addf %43, %44 : vector<1x128xf32>
      %46 = math.rsqrt %45 : vector<1x128xf32>
      %c0_30 = arith.constant 0 : index
      %c0_31 = arith.constant 0 : index
      %47 = vector.load %arg5[%c0_30, %c0_31] : memref<1x128xf32, #tpu.memory_space<vmem>>, vector<1x128xf32>
      tpu.vector_store %arg5[%c0_30, %c0_31], %46 {strides = array<i32>} : memref<1x128xf32, #tpu.memory_space<vmem>>, vector<1x128xf32>,
      %cst_32 = arith.constant 0.000000e+00 : f32
      %48 = vector.broadcast %cst_32 : f32 to vector<1x128xf32>
      %49 = arith.subf %48, %36 : vector<1x128xf32>
      %50 = arith.mulf %49, %46 : vector<1x128xf32>
      %c0_33 = arith.constant 0 : index
      %c0_34 = arith.constant 0 : index
      %51 = vector.load %arg6[%c0_33, %c0_34] : memref<1x128xf32, #tpu.memory_space<vmem>>, vector<1x128xf32>
      tpu.vector_store %arg6[%c0_33, %c0_34], %50 {strides = array<i32>} : memref<1x128xf32, #tpu.memory_space<vmem>>, vector<1x128xf32>,
    } else {
    }
    return
  }
  func.func @transform_0(%arg0: i32) -> (i32, i32) {
    %c0_i32 = arith.constant 0 : i32
    %c0_i32_0 = arith.constant 0 : i32
    return %arg0, %c0_i32 : i32, i32
  }
  func.func @transform_1(%arg0: i32) -> (i32, i32) {
    %c0_i32 = arith.constant 0 : i32
    %c0_i32_0 = arith.constant 0 : i32
    %c0_i32_1 = arith.constant 0 : i32
    return %c0_i32, %c0_i32_0 : i32, i32
  }
  func.func @transform_2(%arg0: i32) -> (i32, i32) {
    %c0_i32 = arith.constant 0 : i32
    %c0_i32_0 = arith.constant 0 : i32
    %c0_i32_1 = arith.constant 0 : i32
    return %c0_i32, %c0_i32_0 : i32, i32
  }
  func.func @transform_3(%arg0: i32) -> (i32, i32) {
    %c0_i32 = arith.constant 0 : i32
    %c0_i32_0 = arith.constant 0 : i32
    return %arg0, %c0_i32 : i32, i32
  }
  func.func @transform_4(%arg0: i32) -> (i32, i32) {
    %c0_i32 = arith.constant 0 : i32
    %c0_i32_0 = arith.constant 0 : i32
    %c0_i32_1 = arith.constant 0 : i32
    return %c0_i32, %c0_i32_0 : i32, i32
  }
  func.func @transform_5(%arg0: i32) -> (i32, i32) {
    %c0_i32 = arith.constant 0 : i32
    %c0_i32_0 = arith.constant 0 : i32
    %c0_i32_1 = arith.constant 0 : i32
    return %c0_i32, %c0_i32_0 : i32, i32
  }
}

module attributes {stable_mosaic.version = 11 : i64} {
  func.func @_linear_kernel(%arg0: i32, %arg1: memref<16x128xf32, #tpu.memory_space<vmem>>, %arg2: memref<128x128xf32, #tpu.memory_space<vmem>>, %arg3: memref<1x128xf32, #tpu.memory_space<vmem>>, %arg4: memref<16x128xf32, #tpu.memory_space<vmem>>) attributes {dimension_semantics = [#tpu.dimension_semantics<parallel>], iteration_bounds = array<i64: 1>, scalar_prefetch = 0 : i64, scratch_operands = 0 : i64, tpu.core_type = #tpu.core_type<tc>, window_params = [{transform_indices = @transform_0, window_bounds = array<i64: 16, 128>}, {pipeline_mode = #tpu.pipeline_mode<synchronous>, transform_indices = @transform_1, window_bounds = array<i64: 128, 128>}, {pipeline_mode = #tpu.pipeline_mode<synchronous>, transform_indices = @transform_2, window_bounds = array<i64: 1, 128>}, {transform_indices = @transform_3, window_bounds = array<i64: 16, 128>}]} {
    %c0 = arith.constant 0 : index
    %c0_0 = arith.constant 0 : index
    %0 = vector.load %arg1[%c0, %c0_0] : memref<16x128xf32, #tpu.memory_space<vmem>>, vector<16x128xf32>
    %c0_1 = arith.constant 0 : index
    %c0_2 = arith.constant 0 : index
    %1 = vector.load %arg2[%c0_1, %c0_2] : memref<128x128xf32, #tpu.memory_space<vmem>>, vector<128x128xf32>
    %cst = arith.constant dense<0.000000e+00> : vector<16x128xf32>
    %2 = tpu.matmul %0, %1, %cst {dimension_numbers = #tpu.dot_dimension_numbers<[1], [0], [0], [1], [0, 0, 1, 1], [], []>} : vector<16x128xf32>, vector<128x128xf32>, vector<16x128xf32> -> vector<16x128xf32>
    %c0_3 = arith.constant 0 : index
    %c0_4 = arith.constant 0 : index
    %3 = vector.load %arg3[%c0_3, %c0_4] : memref<1x128xf32, #tpu.memory_space<vmem>>, vector<1x128xf32>
    %4 = vector.broadcast %3 : vector<1x128xf32> to vector<16x128xf32>
    %5 = arith.addf %2, %4 : vector<16x128xf32>
    %c0_5 = arith.constant 0 : index
    %c0_6 = arith.constant 0 : index
    %6 = vector.load %arg4[%c0_5, %c0_6] : memref<16x128xf32, #tpu.memory_space<vmem>>, vector<16x128xf32>
    tpu.vector_store %arg4[%c0_5, %c0_6], %5 {strides = array<i32>} : memref<16x128xf32, #tpu.memory_space<vmem>>, vector<16x128xf32>,
    return
  }
  func.func @transform_0(%arg0: i32) -> (i32, i32) {
    %c0_i32 = arith.constant 0 : i32
    %c0_i32_0 = arith.constant 0 : i32
    return %arg0, %c0_i32 : i32, i32
  }
  func.func @transform_1(%arg0: i32) -> (i32, i32) {
    %c0_i32 = arith.constant 0 : i32
    %c0_i32_0 = arith.constant 0 : i32
    %c0_i32_1 = arith.constant 0 : i32
    return %c0_i32, %c0_i32_0 : i32, i32
  }
  func.func @transform_2(%arg0: i32) -> (i32, i32) {
    %c0_i32 = arith.constant 0 : i32
    %c0_i32_0 = arith.constant 0 : i32
    %c0_i32_1 = arith.constant 0 : i32
    return %c0_i32, %c0_i32_0 : i32, i32
  }
  func.func @transform_3(%arg0: i32) -> (i32, i32) {
    %c0_i32 = arith.constant 0 : i32
    %c0_i32_0 = arith.constant 0 : i32
    return %arg0, %c0_i32 : i32, i32
  }
}

</mosaic_0001>

<bundles_post_ra>
// kernel: output_layer_forward.5
= control target key start
LH: loop header
LB: loop body
LE: loop exit
PB: predicated region body
PF: predicated region fallthrough
CT: control target
= control target key end

     0   :  { %s165_s1 = inlined_call_operand.vmem [shape: f32[128,128], index: 1, kind: input, shape index: {}]   ;;  %s166_s2 = inlined_call_operand.vmem [shape: f32[1,128], index: 2, kind: input, shape index: {}]   ;;  %s167_s0 = inlined_call_operand.vmem [shape: f32[16,128], index: 0, kind: input, shape index: {}]   ;;  %s168_s3 = inlined_call_operand.vmem [shape: f32[16,128], index: 3, kind: output, shape index: {}]  }
   0x1   :  { %v31_v0 = vld [vmem:[%s165_s1 + $0x78] sm:$0xff]  ;;  %v30_v1 = vld [vmem:[%s165_s1 + $0x70] sm:$0xff]  ;;  %v29_v2 = vld [vmem:[%s165_s1 + $0x68] sm:$0xff] }
   0x2   :  { %36 = vmatpush.msra.mxu0 %v31_v0  ;;  %65 = vmatpush.msra.mxu1 %v31_v0  ;;  %v28_v3 = vld [vmem:[%s165_s1 + $0x60] sm:$0xff]  ;;  %v27_v4 = vld [vmem:[%s165_s1 + $0x58] sm:$0xff]  ;;  %v26_v5 = vld [vmem:[%s165_s1 + $0x50] sm:$0xff] }
   0x3   :  { %v25_v6 = vld [vmem:[%s165_s1 + $0x48] sm:$0xff]  ;;  %v24_v7 = vld [vmem:[%s165_s1 + $0x40] sm:$0xff]  ;;  %v23_v8 = vld [vmem:[%s165_s1 + $0x38] sm:$0xff] }
   0x4   :  { %37 = vmatpush.msra.mxu0 %v30_v1  ;;  %66 = vmatpush.msra.mxu1 %v30_v1  ;;  %v22_v9 = vld [vmem:[%s165_s1 + $0x30] sm:$0xff]  ;;  %v21_v10 = vld [vmem:[%s165_s1 + $0x28] sm:$0xff]  ;;  %v20_v11 = vld [vmem:[%s165_s1 + $0x20] sm:$0xff] }
   0x5   :  { %v19_v12 = vld [vmem:[%s165_s1 + $0x18] sm:$0xff]  ;;  %v18_v13 = vld [vmem:[%s165_s1 + $0x10] sm:$0xff]  ;;  %v17_v14 = vld [vmem:[%s165_s1 + $0x8] sm:$0xff] }
   0x6   :  { %38 = vmatpush.msra.mxu0 %v29_v2  ;;  %67 = vmatpush.msra.mxu1 %v29_v2  ;;  %v16_v15 = vld [vmem:[%s165_s1] sm:$0xff]  ;;  %v15_v17 = vld [vmem:[%s167_s0 + $0x8] sm:$0xff] }
   0x7   :  { %v14_v16 = vld [vmem:[%s167_s0] sm:$0xff] }
   0x8   :  { %39 = vmatpush.msra.mxu0 %v28_v3  ;;  %68 = vmatpush.msra.mxu1 %v28_v3  ;;  %v81_v18 = vld [vmem:[%s166_s2] ss:$0 sm:$0xff] }
   0xa   :  { %40 = vmatpush.msra.mxu0 %v27_v4  ;;  %69 = vmatpush.msra.mxu1 %v27_v4 }
   0xc   :  { %41 = vmatpush.msra.mxu0 %v26_v5  ;;  %70 = vmatpush.msra.mxu1 %v26_v5 }
   0xe   :  { %42 = vmatpush.msra.mxu0 %v25_v6  ;;  %71 = vmatpush.msra.mxu1 %v25_v6 }
  0x10   :  { %43 = vmatpush.msra.mxu0 %v24_v7  ;;  %72 = vmatpush.msra.mxu1 %v24_v7 }
  0x12   :  { %44 = vmatpush.msra.mxu0 %v23_v8  ;;  %73 = vmatpush.msra.mxu1 %v23_v8 }
  0x14   :  { %45 = vmatpush.msra.mxu0 %v22_v9  ;;  %74 = vmatpush.msra.mxu1 %v22_v9 }
  0x16   :  { %46 = vmatpush.msra.mxu0 %v21_v10  ;;  %75 = vmatpush.msra.mxu1 %v21_v10 }
  0x18   :  { %47 = vmatpush.msra.mxu0 %v20_v11  ;;  %76 = vmatpush.msra.mxu1 %v20_v11 }
  0x1a   :  { %48 = vmatpush.msra.mxu0 %v19_v12  ;;  %77 = vmatpush.msra.mxu1 %v19_v12 }
  0x1c   :  { %49 = vmatpush.msra.mxu0 %v18_v13  ;;  %78 = vmatpush.msra.mxu1 %v18_v13 }
  0x1e   :  { %50 = vmatpush.msra.mxu0 %v17_v14  ;;  %79 = vmatpush.msra.mxu1 %v17_v14 }
  0x20   :  { %51 = vmatpush.msra.mxu0 %v16_v15  ;;  %80 = vmatpush.msra.mxu1 %v16_v15 }
  0x21   :  { %52 = vmatmul.f32.vlgmr.msra.gmra.mxu0 %v14_v16  ;;  %55 = vmatmul.f32.vlgmr.msra.gmra.mxu1 %v15_v17 }
  0x9e   :  { %v53_v19 = vpop.f32.mrf.mxu0  ;;  %v56_v20 = vpop.f32.mrf.mxu1 }
  0x9f   :  { %v54_v21 = vadd.f32 %v81_v18, %v53_v19  ;;  %v57_v22 = vadd.f32 %v81_v18, %v56_v20 }
  0xa1   :  { %59 = vst [vmem:[%s168_s3] sm:$0xff] %v54_v21 }
  0xa2   :  { %60 = vst [vmem:[%s168_s3 + $0x8] sm:$0xff] %v57_v22 }

// kernel: output_layer_forward.3
= control target key start
LH: loop header
LB: loop body
LE: loop exit
PB: predicated region body
PF: predicated region fallthrough
CT: control target
= control target key end

     0   :  { %v166_v18 = vmov 0.0   ;;  %s290_s1 = inlined_call_operand.vmem [shape: f32[128,128], index: 1, kind: input, shape index: {}]   ;;  %s291_s2 = inlined_call_operand.vmem [shape: f32[1,128], index: 2, kind: input, shape index: {}]   ;;  %s292_s0 = inlined_call_operand.vmem [shape: f32[16,128], index: 0, kind: input, shape index: {}]   ;;  %s293_s4 = inlined_call_operand.vmem [shape: f32[1,128], index: 4, kind: output, shape index: {1}]   ;;  %s294_s5 = inlined_call_operand.vmem [shape: f32[1,128], index: 5, kind: output, shape index: {2}]   ;;  %s295_s3 = inlined_call_operand.vmem [shape: f32[16,128], index: 3, kind: output, shape index: {0}]  }
   0x1   :  { %v40_v0 = vld [vmem:[%s290_s1 + $0x78] sm:$0xff]  ;;  %v39_v1 = vld [vmem:[%s290_s1 + $0x70] sm:$0xff]  ;;  %v38_v2 = vld [vmem:[%s290_s1 + $0x68] sm:$0xff]  ;;  %21 = vst [vmem:[%s293_s4] sm:$0x1] %v166_v18 }
   0x2   :  { %45 = vmatpush.msra.mxu0 %v40_v0  ;;  %146 = vmatpush.msra.mxu1 %v40_v0  ;;  %v37_v3 = vld [vmem:[%s290_s1 + $0x60] sm:$0xff]  ;;  %v36_v4 = vld [vmem:[%s290_s1 + $0x58] sm:$0xff]  ;;  %v35_v5 = vld [vmem:[%s290_s1 + $0x50] sm:$0xff]  ;;  %22 = vst [vmem:[%s294_s5] sm:$0x1] %v166_v18 }
   0x3   :  { %v34_v6 = vld [vmem:[%s290_s1 + $0x48] sm:$0xff]  ;;  %v33_v7 = vld [vmem:[%s290_s1 + $0x40] sm:$0xff]  ;;  %v32_v8 = vld [vmem:[%s290_s1 + $0x38] sm:$0xff] }
   0x4   :  { %46 = vmatpush.msra.mxu0 %v39_v1  ;;  %147 = vmatpush.msra.mxu1 %v39_v1  ;;  %v31_v9 = vld [vmem:[%s290_s1 + $0x30] sm:$0xff]  ;;  %v30_v10 = vld [vmem:[%s290_s1 + $0x28] sm:$0xff]  ;;  %v29_v11 = vld [vmem:[%s290_s1 + $0x20] sm:$0xff] }
   0x5   :  { %v28_v12 = vld [vmem:[%s290_s1 + $0x18] sm:$0xff]  ;;  %v27_v13 = vld [vmem:[%s290_s1 + $0x10] sm:$0xff]  ;;  %v26_v14 = vld [vmem:[%s290_s1 + $0x8] sm:$0xff] }
   0x6   :  { %47 = vmatpush.msra.mxu0 %v38_v2  ;;  %148 = vmatpush.msra.mxu1 %v38_v2  ;;  %v25_v15 = vld [vmem:[%s290_s1] sm:$0xff]  ;;  %v24_v17 = vld [vmem:[%s292_s0 + $0x8] sm:$0xff] }
   0x7   :  { %v23_v16 = vld [vmem:[%s292_s0] sm:$0xff] }
   0x8   :  { %48 = vmatpush.msra.mxu0 %v37_v3  ;;  %149 = vmatpush.msra.mxu1 %v37_v3  ;;  %v163_v19 = vld [vmem:[%s291_s2] ss:$0 sm:$0xff] }
   0x9   :  { %v87_v39 = vld [vmem:[%s293_s4] sm:$0x1] }
   0xa   :  { %49 = vmatpush.msra.mxu0 %v36_v4  ;;  %150 = vmatpush.msra.mxu1 %v36_v4  ;;  %v97_v42 = vld [vmem:[%s294_s5] sm:$0x1] }
   0xc   :  { %50 = vmatpush.msra.mxu0 %v35_v5  ;;  %151 = vmatpush.msra.mxu1 %v35_v5 }
   0xe   :  { %51 = vmatpush.msra.mxu0 %v34_v6  ;;  %152 = vmatpush.msra.mxu1 %v34_v6 }
  0x10   :  { %52 = vmatpush.msra.mxu0 %v33_v7  ;;  %153 = vmatpush.msra.mxu1 %v33_v7 }
  0x12   :  { %53 = vmatpush.msra.mxu0 %v32_v8  ;;  %154 = vmatpush.msra.mxu1 %v32_v8 }
  0x14   :  { %54 = vmatpush.msra.mxu0 %v31_v9  ;;  %155 = vmatpush.msra.mxu1 %v31_v9 }
  0x16   :  { %55 = vmatpush.msra.mxu0 %v30_v10  ;;  %156 = vmatpush.msra.mxu1 %v30_v10 }
  0x18   :  { %56 = vmatpush.msra.mxu0 %v29_v11  ;;  %157 = vmatpush.msra.mxu1 %v29_v11 }
  0x1a   :  { %57 = vmatpush.msra.mxu0 %v28_v12  ;;  %158 = vmatpush.msra.mxu1 %v28_v12 }
  0x1c   :  { %58 = vmatpush.msra.mxu0 %v27_v13  ;;  %159 = vmatpush.msra.mxu1 %v27_v13 }
  0x1e   :  { %59 = vmatpush.msra.mxu0 %v26_v14  ;;  %160 = vmatpush.msra.mxu1 %v26_v14 }
  0x20   :  { %60 = vmatpush.msra.mxu0 %v25_v15  ;;  %161 = vmatpush.msra.mxu1 %v25_v15 }
  0x21   :  { %61 = vmatmul.f32.vlgmr.msra.gmra.mxu0 %v23_v16  ;;  %64 = vmatmul.f32.vlgmr.msra.gmra.mxu1 %v24_v17 }
  0x9e   :  { %v62_v20 = vpop.f32.mrf.mxu0  ;;  %v65_v21 = vpop.f32.mrf.mxu1 }
  0x9f   :  { %v63_v22 = vadd.f32 %v163_v19, %v62_v20  ;;  %v66_v23 = vadd.f32 %v163_v19, %v65_v21 }
  0xa1   :  { %v68_v24 = vmax.f32 %v63_v22, 0.0  ;;  %v69_v25 = vmax.f32 %v66_v23, 0.0 }
  0xa3   :  { %70 = vst [vmem:[%s295_s3] sm:$0xff] %v68_v24  ;;  %v98_v26 = vmul.f32 %v68_v24, %v68_v24  ;;  %v88_v27 = vadd.f32 %v69_v25, %v68_v24  ;;  %v99_v28 = vmul.f32 %v69_v25, %v69_v25 }
  0xa4   :  { %71 = vst [vmem:[%s295_s3 + $0x8] sm:$0xff] %v69_v25 }
  0xa5   :  { %v89_v29 = vrot.slane %v88_v27, 4  ;;  %v100_v30 = vadd.f32 %v99_v28, %v98_v26 }
  0xa7   :  { %v90_v31 = vadd.f32 %v89_v29, %v88_v27  ;;  %v101_v32 = vrot.slane %v100_v30, 4 }
  0xa9   :  { %v91_v33 = vrot.slane %v90_v31, 2  ;;  %v102_v34 = vadd.f32 %v101_v32, %v100_v30 }
  0xab   :  { %v92_v35 = vadd.f32 %v91_v33, %v90_v31  ;;  %v103_v36 = vrot.slane %v102_v34, 2 }
  0xad   :  { %v93_v37 = vrot.slane %v92_v35, 1  ;;  %v104_v38 = vadd.f32 %v103_v36, %v102_v34 }
  0xaf   :  { %v94_v40 = vadd.f32 %v93_v37, %v92_v35  ;;  %v105_v41 = vrot.slane %v104_v38, 1 }
  0xb1   :  { %v95_v43 = vadd.f32 %v94_v40, %v87_v39  ;;  %v106_v44 = vadd.f32 %v105_v41, %v104_v38 }
  0xb3   :  { %96 = vst [vmem:[%s293_s4] sm:$0x1] %v95_v43  ;;  %v107_v45 = vadd.f32 %v106_v44, %v97_v42 }
  0xb5   :  { %108 = vst [vmem:[%s294_s5] sm:$0x1] %v107_v45 }
  0xba   :  { %v112_v46 = vld [vmem:[%s293_s4] sm:$0x1] }
  0xbb   :  { %v113_v47 = vmul.f32 0.0625, %v112_v46 }
  0xbc   :  { %v114_v48 = vld [vmem:[%s294_s5] sm:$0x1] }
  0xbd   :  { %v115_v49 = vmul.f32 0.0625, %v114_v48  ;;  %v116_v50 = vmul.f32 %v113_v47, %v113_v47  ;;  %v131_v60 = vsub.f32 0.0, %v113_v47 }
  0xbf   :  { %v117_v51 = vsub.f32 %v115_v49, %v116_v50 }
  0xc1   :  { %v118_v52 = vmax.f32 %v117_v51, 0.0 }
  0xc3   :  { %v119_v53 = vadd.f32 1e-05, %v118_v52 }
  0xc5   :  { %164 = vrsqrt.f32 %v119_v53  ;;  %vm126_vm1 = vweird.f32 %v119_v53 }
  0xcb   :  { %v165_v54 = vpop.eup %164 }
  0xcc   :  { %v121_v55 = vmul.f32 %v165_v54, %v119_v53  ;;  %vm127_vm0 = vweird.f32 %v165_v54 }
  0xcd   :  { %vm128_vm2 = vmor %vm126_vm1, %vm127_vm0 }
  0xce   :  { %v122_v56 = vmul.f32 %v165_v54, %v121_v55 }
  0xd0   :  { %v123_v57 = vmul.f32 0.5, %v122_v56 }
  0xd2   :  { %v124_v58 = vsub.f32 1.5, %v123_v57 }
  0xd4   :  { %v125_v59 = vmul.f32 %v165_v54, %v124_v58 }
  0xd6   :  { %v129_v61 = vsel %vm128_vm2, %v165_v54, %v125_v59 }
  0xd7   :  { %130 = vst [vmem:[%s293_s4] sm:$0x1] %v129_v61  ;;  %v132_v62 = vmul.f32 %v131_v60, %v129_v61 }
  0xd9   :  { %133 = vst [vmem:[%s294_s5] sm:$0x1] %v132_v62 }

// kernel: output_layer_forward.4
= control target key start
LH: loop header
LB: loop body
LE: loop exit
PB: predicated region body
PF: predicated region fallthrough
CT: control target
= control target key end

     0   :  { %v164_v18 = vmov 0.0   ;;  %s288_s1 = inlined_call_operand.vmem [shape: f32[128,128], index: 1, kind: input, shape index: {}]   ;;  %s289_s2 = inlined_call_operand.vmem [shape: f32[1,128], index: 2, kind: input, shape index: {}]   ;;  %s290_s0 = inlined_call_operand.vmem [shape: f32[16,128], index: 0, kind: input, shape index: {}]   ;;  %s291_s4 = inlined_call_operand.vmem [shape: f32[1,128], index: 4, kind: output, shape index: {1}]   ;;  %s292_s5 = inlined_call_operand.vmem [shape: f32[1,128], index: 5, kind: output, shape index: {2}]   ;;  %s293_s3 = inlined_call_operand.vmem [shape: f32[16,128], index: 3, kind: output, shape index: {0}]  }
   0x1   :  { %v40_v0 = vld [vmem:[%s288_s1 + $0x78] sm:$0xff]  ;;  %v39_v1 = vld [vmem:[%s288_s1 + $0x70] sm:$0xff]  ;;  %v38_v2 = vld [vmem:[%s288_s1 + $0x68] sm:$0xff]  ;;  %21 = vst [vmem:[%s291_s4] sm:$0x1] %v164_v18 }
   0x2   :  { %45 = vmatpush.msra.mxu0 %v40_v0  ;;  %144 = vmatpush.msra.mxu1 %v40_v0  ;;  %v37_v3 = vld [vmem:[%s288_s1 + $0x60] sm:$0xff]  ;;  %v36_v4 = vld [vmem:[%s288_s1 + $0x58] sm:$0xff]  ;;  %v35_v5 = vld [vmem:[%s288_s1 + $0x50] sm:$0xff]  ;;  %22 = vst [vmem:[%s292_s5] sm:$0x1] %v164_v18 }
   0x3   :  { %v34_v6 = vld [vmem:[%s288_s1 + $0x48] sm:$0xff]  ;;  %v33_v7 = vld [vmem:[%s288_s1 + $0x40] sm:$0xff]  ;;  %v32_v8 = vld [vmem:[%s288_s1 + $0x38] sm:$0xff] }
   0x4   :  { %46 = vmatpush.msra.mxu0 %v39_v1  ;;  %145 = vmatpush.msra.mxu1 %v39_v1  ;;  %v31_v9 = vld [vmem:[%s288_s1 + $0x30] sm:$0xff]  ;;  %v30_v10 = vld [vmem:[%s288_s1 + $0x28] sm:$0xff]  ;;  %v29_v11 = vld [vmem:[%s288_s1 + $0x20] sm:$0xff] }
   0x5   :  { %v28_v12 = vld [vmem:[%s288_s1 + $0x18] sm:$0xff]  ;;  %v27_v13 = vld [vmem:[%s288_s1 + $0x10] sm:$0xff]  ;;  %v26_v14 = vld [vmem:[%s288_s1 + $0x8] sm:$0xff] }
   0x6   :  { %47 = vmatpush.msra.mxu0 %v38_v2  ;;  %146 = vmatpush.msra.mxu1 %v38_v2  ;;  %v25_v15 = vld [vmem:[%s288_s1] sm:$0xff]  ;;  %v24_v17 = vld [vmem:[%s290_s0 + $0x8] sm:$0xff] }
   0x7   :  { %v23_v16 = vld [vmem:[%s290_s0] sm:$0xff] }
   0x8   :  { %48 = vmatpush.msra.mxu0 %v37_v3  ;;  %147 = vmatpush.msra.mxu1 %v37_v3  ;;  %v161_v19 = vld [vmem:[%s289_s2] ss:$0 sm:$0xff] }
   0x9   :  { %v85_v37 = vld [vmem:[%s291_s4] sm:$0x1] }
   0xa   :  { %49 = vmatpush.msra.mxu0 %v36_v4  ;;  %148 = vmatpush.msra.mxu1 %v36_v4  ;;  %v95_v40 = vld [vmem:[%s292_s5] sm:$0x1] }
   0xc   :  { %50 = vmatpush.msra.mxu0 %v35_v5  ;;  %149 = vmatpush.msra.mxu1 %v35_v5 }
   0xe   :  { %51 = vmatpush.msra.mxu0 %v34_v6  ;;  %150 = vmatpush.msra.mxu1 %v34_v6 }
  0x10   :  { %52 = vmatpush.msra.mxu0 %v33_v7  ;;  %151 = vmatpush.msra.mxu1 %v33_v7 }
  0x12   :  { %53 = vmatpush.msra.mxu0 %v32_v8  ;;  %152 = vmatpush.msra.mxu1 %v32_v8 }
  0x14   :  { %54 = vmatpush.msra.mxu0 %v31_v9  ;;  %153 = vmatpush.msra.mxu1 %v31_v9 }
  0x16   :  { %55 = vmatpush.msra.mxu0 %v30_v10  ;;  %154 = vmatpush.msra.mxu1 %v30_v10 }
  0x18   :  { %56 = vmatpush.msra.mxu0 %v29_v11  ;;  %155 = vmatpush.msra.mxu1 %v29_v11 }
  0x1a   :  { %57 = vmatpush.msra.mxu0 %v28_v12  ;;  %156 = vmatpush.msra.mxu1 %v28_v12 }
  0x1c   :  { %58 = vmatpush.msra.mxu0 %v27_v13  ;;  %157 = vmatpush.msra.mxu1 %v27_v13 }
  0x1e   :  { %59 = vmatpush.msra.mxu0 %v26_v14  ;;  %158 = vmatpush.msra.mxu1 %v26_v14 }
  0x20   :  { %60 = vmatpush.msra.mxu0 %v25_v15  ;;  %159 = vmatpush.msra.mxu1 %v25_v15 }
  0x21   :  { %61 = vmatmul.f32.vlgmr.msra.gmra.mxu0 %v23_v16  ;;  %64 = vmatmul.f32.vlgmr.msra.gmra.mxu1 %v24_v17 }
  0x9e   :  { %v62_v20 = vpop.f32.mrf.mxu0  ;;  %v65_v21 = vpop.f32.mrf.mxu1 }
  0x9f   :  { %v63_v22 = vadd.f32 %v161_v19, %v62_v20  ;;  %v66_v23 = vadd.f32 %v161_v19, %v65_v21 }
  0xa1   :  { %68 = vst [vmem:[%s293_s3] sm:$0xff] %v63_v22  ;;  %v96_v24 = vmul.f32 %v63_v22, %v63_v22  ;;  %v86_v25 = vadd.f32 %v66_v23, %v63_v22  ;;  %v97_v26 = vmul.f32 %v66_v23, %v66_v23 }
  0xa2   :  { %69 = vst [vmem:[%s293_s3 + $0x8] sm:$0xff] %v66_v23 }
  0xa3   :  { %v87_v27 = vrot.slane %v86_v25, 4  ;;  %v98_v28 = vadd.f32 %v97_v26, %v96_v24 }
  0xa5   :  { %v88_v29 = vadd.f32 %v87_v27, %v86_v25  ;;  %v99_v30 = vrot.slane %v98_v28, 4 }
  0xa7   :  { %v89_v31 = vrot.slane %v88_v29, 2  ;;  %v100_v32 = vadd.f32 %v99_v30, %v98_v28 }
  0xa9   :  { %v90_v33 = vadd.f32 %v89_v31, %v88_v29  ;;  %v101_v34 = vrot.slane %v100_v32, 2 }
  0xab   :  { %v91_v35 = vrot.slane %v90_v33, 1  ;;  %v102_v36 = vadd.f32 %v101_v34, %v100_v32 }
  0xad   :  { %v92_v38 = vadd.f32 %v91_v35, %v90_v33  ;;  %v103_v39 = vrot.slane %v102_v36, 1 }
  0xaf   :  { %v93_v41 = vadd.f32 %v92_v38, %v85_v37  ;;  %v104_v42 = vadd.f32 %v103_v39, %v102_v36 }
  0xb1   :  { %94 = vst [vmem:[%s291_s4] sm:$0x1] %v93_v41  ;;  %v105_v43 = vadd.f32 %v104_v42, %v95_v40 }
  0xb3   :  { %106 = vst [vmem:[%s292_s5] sm:$0x1] %v105_v43 }
  0xb8   :  { %v110_v44 = vld [vmem:[%s291_s4] sm:$0x1] }
  0xb9   :  { %v111_v45 = vmul.f32 0.0625, %v110_v44 }
  0xba   :  { %v112_v46 = vld [vmem:[%s292_s5] sm:$0x1] }
  0xbb   :  { %v113_v47 = vmul.f32 0.0625, %v112_v46  ;;  %v114_v48 = vmul.f32 %v111_v45, %v111_v45  ;;  %v129_v58 = vsub.f32 0.0, %v111_v45 }
  0xbd   :  { %v115_v49 = vsub.f32 %v113_v47, %v114_v48 }
  0xbf   :  { %v116_v50 = vmax.f32 %v115_v49, 0.0 }
  0xc1   :  { %v117_v51 = vadd.f32 1e-05, %v116_v50 }
  0xc3   :  { %162 = vrsqrt.f32 %v117_v51  ;;  %vm124_vm1 = vweird.f32 %v117_v51 }
  0xc9   :  { %v163_v52 = vpop.eup %162 }
  0xca   :  { %v119_v53 = vmul.f32 %v163_v52, %v117_v51  ;;  %vm125_vm0 = vweird.f32 %v163_v52 }
  0xcb   :  { %vm126_vm2 = vmor %vm124_vm1, %vm125_vm0 }
  0xcc   :  { %v120_v54 = vmul.f32 %v163_v52, %v119_v53 }
  0xce   :  { %v121_v55 = vmul.f32 0.5, %v120_v54 }
  0xd0   :  { %v122_v56 = vsub.f32 1.5, %v121_v55 }
  0xd2   :  { %v123_v57 = vmul.f32 %v163_v52, %v122_v56 }
  0xd4   :  { %v127_v59 = vsel %vm126_vm2, %v163_v52, %v123_v57 }
  0xd5   :  { %128 = vst [vmem:[%s291_s4] sm:$0x1] %v127_v59  ;;  %v130_v60 = vmul.f32 %v129_v58, %v127_v59 }
  0xd7   :  { %131 = vst [vmem:[%s292_s5] sm:$0x1] %v130_v60 }

</bundles_post_ra>
